<compile_context>
chip_gen: v6e
topology: v6e:2x2x1
jax: 0.10.0
libtpu: 0.0.40
codegen_flags: <defaults>
</compile_context>

<pallas_src>
import functools

import jax
import jax.numpy as jnp
from jax.experimental import pallas as pl
from jax.experimental.pallas import tpu as pltpu

IN_FEATURES = 28 * 28  # 784, fixed by the module
OUT_LANES = 128        # lane-dense padded output width


def _activation_fn(name):
    if name == 'relu':
        return lambda x: jnp.maximum(x, 0.0)
    elif name == 'elu':
        return lambda x: jnp.where(x > 0.0, x, jnp.expm1(x))
    elif name == 'leaky_relu':
        return lambda x: jnp.where(x > 0.0, x, 0.2 * x)
    elif name == 'tanh':
        return jnp.tanh
    else:
        raise NotImplementedError('activation [%s] is not found' % name)


def _dual_mlp_kernel(x_ref, w0_ref, wh_ref, wf_ref, b_ref, out_ref, *,
                     n_layers, n_hidden, act):
    """One batch tile of the full MLP.

    x_ref:   (TB, 784)            bf16
    w0_ref:  (784, H)             bf16
    wh_ref:  (max(L-1,1), H, H)   bf16   stacked hidden weights
    wf_ref:  (H, 128)             bf16   final weight, zero-padded to 128 lanes
    b_ref:   (L+1, 128)           f32    row i = bias of layer i (zero-padded)
    out_ref: (TB, 128)            f32    only column 0 is meaningful
    """
    H = n_hidden

    # Layer 0: (TB,784) @ (784,H) on the MXU, f32 accumulate.
    h = jnp.dot(x_ref[...], w0_ref[...], preferred_element_type=jnp.float32)
    h = act(h + b_ref[0:1, :H])                       # f32 bias + activation

    # Hidden layers 1..L-1 (static unrolled Python loop).
    for i in range(n_layers - 1):
        w = wh_ref[i]                                 # (H, H) bf16
        h = jnp.dot(h.astype(jnp.bfloat16), w,
                    preferred_element_type=jnp.float32)
        h = act(h + b_ref[i + 1:i + 2, :H])

    # Final layer, lane-dense padded to 128 output columns.
    out = jnp.dot(h.astype(jnp.bfloat16), wf_ref[...],
                  preferred_element_type=jnp.float32)
    out_ref[...] = out + b_ref[n_layers:n_layers + 1, :]


def init_dual_params(key, n_hidden, n_layers, in_features=IN_FEATURES):
    """Params matching nn.Linear default init (uniform +-1/sqrt(fan_in)).

    Weights stored as (in_features, out_features) f32 so the kernel does x @ W.
    Returns [w0, b0, w1, b1, ..., w_final, b_final].
    """
    params = []
    in_h = in_features
    out_h = n_hidden
    for _ in range(n_layers):
        key, kw, kb = jax.random.split(key, 3)
        bound = 1.0 / jnp.sqrt(in_h)
        w = jax.random.uniform(kw, (in_h, out_h), jnp.float32, -bound, bound)
        b = jax.random.uniform(kb, (1, out_h), jnp.float32, -bound, bound)
        params += [w, b]
        in_h = out_h
        out_h = n_hidden
    key, kw, kb = jax.random.split(key, 3)
    bound = 1.0 / jnp.sqrt(n_hidden)
    w = jax.random.uniform(kw, (n_hidden, 1), jnp.float32, -bound, bound)
    b = jax.random.uniform(kb, (1, 1), jnp.float32, -bound, bound)
    params += [w, b]
    return params


def pack_dual_params(params, n_hidden):
    """Pack torch-style param list into the 4 kernel operands (bf16 weights)."""
    n_layers = len(params) // 2 - 1
    H = n_hidden

    w0 = params[0].astype(jnp.bfloat16)                               # (784, H)

    if n_layers > 1:
        wh = jnp.stack([params[2 * i] for i in range(1, n_layers)])   # (L-1,H,H)
    else:
        wh = jnp.zeros((1, H, H), jnp.float32)                        # dummy
    wh = wh.astype(jnp.bfloat16)

    wf = jnp.zeros((H, OUT_LANES), jnp.float32)
    wf = wf.at[:, 0:1].set(params[2 * n_layers])                      # (H, 128)
    wf = wf.astype(jnp.bfloat16)

    b = jnp.zeros((n_layers + 1, OUT_LANES), jnp.float32)
    for i in range(n_layers):
        b = b.at[i, :H].set(params[2 * i + 1].reshape(-1))
    b = b.at[n_layers, 0].set(params[2 * n_layers + 1].reshape(-1)[0])

    return w0, wh, wf, b, n_layers


def dual_forward(x, params, activation, n_hidden, *, block_b=256):
    """Pallas forward of DUAL. x: (B, C, H, W) with C*H*W == 784."""
    B = x.shape[0]
    x2 = x.reshape(B, -1).astype(jnp.bfloat16)          # torch .view(B, -1), bf16 stream
    in_features = x2.shape[1]
    w0, wh, wf, b, n_layers = pack_dual_params(params, n_hidden)
    H = n_hidden

    # Batch tile: multiple of 8 when tiling, or the full (small) batch.
    TB = block_b if B > block_b else B
    grid = (pl.cdiv(B, TB),)

    kernel = functools.partial(
        _dual_mlp_kernel,
        n_layers=n_layers, n_hidden=H, act=_activation_fn(activation))

    out_pad = pl.pallas_call(
        kernel,
        out_shape=jax.ShapeDtypeStruct((B, OUT_LANES), jnp.float32),
        grid=grid,
        in_specs=[
            pl.BlockSpec((TB, in_features), lambda i: (i, 0)),        # x tile
            pl.BlockSpec((in_features, H), lambda i: (0, 0)),         # w0 (resident)
            pl.BlockSpec(wh.shape, lambda i: (0, 0, 0)),              # hidden weights
            pl.BlockSpec((H, OUT_LANES), lambda i: (0, 0)),           # final weight
            pl.BlockSpec((n_layers + 1, OUT_LANES), lambda i: (0, 0)),  # biases
        ],
        out_specs=pl.BlockSpec((TB, OUT_LANES), lambda i: (i, 0)),
        compiler_params=pltpu.CompilerParams(
            dimension_semantics=("parallel",)),
    )(x2, w0, wh, wf, b)

    # Column 0 holds the real output; squeeze() matches torch semantics.
    return jnp.squeeze(out_pad[:, :1])


def dual_forward_ref(x, params, activation):
    """Pure-JAX reference mirroring the kernel's bf16-input / f32-accumulate dots.

    (A full-f32 PyTorch Linear would differ from this by ~bf16 epsilon over the
    K=784 contraction; the kernel intentionally trades that for 2x less DMA.)
    """
    act = _activation_fn(activation)
    B = x.shape[0]
    h = x.reshape(B, -1).astype(jnp.float32)
    n_layers = len(params) // 2 - 1
    for i in range(n_layers):
        w = params[2 * i].astype(jnp.bfloat16)
        h = jnp.dot(h.astype(jnp.bfloat16), w,
                    preferred_element_type=jnp.float32)
        h = act(h + params[2 * i + 1])
    w = params[2 * n_layers].astype(jnp.bfloat16)
    out = jnp.dot(h.astype(jnp.bfloat16), w,
                  preferred_element_type=jnp.float32) + params[2 * n_layers + 1]
    return jnp.squeeze(out)


if __name__ == "__main__":
    key = jax.random.PRNGKey(0)
    k_x, k_p = jax.random.split(key)

    # Small shapes consistent with the module: MNIST-like input, tiny MLP.
    batch = 4
    n_hidden = 32
    n_layers = 3

    x = jax.random.normal(k_x, (batch, 1, 28, 28), dtype=jnp.float32)
    params = init_dual_params(k_p, n_hidden, n_layers)

    for activation in ('relu', 'elu'):
        out = dual_forward(x, params, activation, n_hidden)
        out = jax.block_until_ready(out)
        ref = dual_forward_ref(x, params, activation)
        assert out.shape == (batch,), out.shape
        assert jnp.allclose(out, ref, atol=1e-4, rtol=1e-4), (activation, out, ref)

    print("KERNEL_OK")
</pallas_src>

<mosaic_0001>
module attributes {stable_mosaic.version = 11 : i64} {
  func.func @_dual_mlp_kernel(%arg0: i32, %arg1: memref<4x784xbf16, #tpu.memory_space<vmem>>, %arg2: memref<784x32xbf16, #tpu.memory_space<vmem>>, %arg3: memref<2x32x32xbf16, #tpu.memory_space<vmem>>, %arg4: memref<32x128xbf16, #tpu.memory_space<vmem>>, %arg5: memref<4x128xf32, #tpu.memory_space<vmem>>, %arg6: memref<4x128xf32, #tpu.memory_space<vmem>>) attributes {dimension_semantics = [#tpu.dimension_semantics<parallel>], iteration_bounds = array<i64: 1>, scalar_prefetch = 0 : i64, scratch_operands = 0 : i64, tpu.core_type = #tpu.core_type<tc>, window_params = [{transform_indices = @transform_0, window_bounds = array<i64: 4, 784>}, {pipeline_mode = #tpu.pipeline_mode<synchronous>, transform_indices = @transform_1, window_bounds = array<i64: 784, 32>}, {pipeline_mode = #tpu.pipeline_mode<synchronous>, transform_indices = @transform_2, window_bounds = array<i64: 2, 32, 32>}, {pipeline_mode = #tpu.pipeline_mode<synchronous>, transform_indices = @transform_3, window_bounds = array<i64: 32, 128>}, {pipeline_mode = #tpu.pipeline_mode<synchronous>, transform_indices = @transform_4, window_bounds = array<i64: 4, 128>}, {transform_indices = @transform_5, window_bounds = array<i64: 4, 128>}]} {
    %c0 = arith.constant 0 : index
    %c0_0 = arith.constant 0 : index
    %0 = vector.load %arg1[%c0, %c0_0] : memref<4x784xbf16, #tpu.memory_space<vmem>>, vector<4x784xbf16>
    %c0_1 = arith.constant 0 : index
    %c0_2 = arith.constant 0 : index
    %1 = vector.load %arg2[%c0_1, %c0_2] : memref<784x32xbf16, #tpu.memory_space<vmem>>, vector<784x32xbf16>
    %cst = arith.constant dense<0.000000e+00> : vector<4x32xf32>
    %2 = tpu.matmul %0, %1, %cst {dimension_numbers = #tpu.dot_dimension_numbers<[1], [0], [0], [1], [0, 0, 1, 1], [], []>} : vector<4x784xbf16>, vector<784x32xbf16>, vector<4x32xf32> -> vector<4x32xf32>
    %c0_3 = arith.constant 0 : index
    %c0_4 = arith.constant 0 : index
    %3 = vector.load %arg5[%c0_3, %c0_4] : memref<4x128xf32, #tpu.memory_space<vmem>>, vector<1x32xf32>
    %4 = vector.broadcast %3 : vector<1x32xf32> to vector<4x32xf32>
    %5 = arith.addf %2, %4 : vector<4x32xf32>
    %cst_5 = arith.constant 0.000000e+00 : f32
    %6 = vector.broadcast %cst_5 : f32 to vector<4x32xf32>
    %7 = arith.maximumf %5, %6 : vector<4x32xf32>
    %c0_6 = arith.constant 0 : index
    %c0_7 = arith.constant 0 : index
    %c0_8 = arith.constant 0 : index
    %8 = vector.load %arg3[%c0_6, %c0_7, %c0_8] : memref<2x32x32xbf16, #tpu.memory_space<vmem>>, vector<1x32x32xbf16>
    %9 = vector.shape_cast %8 : vector<1x32x32xbf16> to vector<32x32xbf16>
    %10 = arith.truncf %7 : vector<4x32xf32> to vector<4x32xbf16>
    %cst_9 = arith.constant dense<0.000000e+00> : vector<4x32xf32>
    %11 = tpu.matmul %10, %9, %cst_9 {dimension_numbers = #tpu.dot_dimension_numbers<[1], [0], [0], [1], [0, 0, 1, 1], [], []>} : vector<4x32xbf16>, vector<32x32xbf16>, vector<4x32xf32> -> vector<4x32xf32>
    %c1 = arith.constant 1 : index
    %c0_10 = arith.constant 0 : index
    %12 = vector.load %arg5[%c1, %c0_10] : memref<4x128xf32, #tpu.memory_space<vmem>>, vector<1x32xf32>
    %13 = vector.broadcast %12 : vector<1x32xf32> to vector<4x32xf32>
    %14 = arith.addf %11, %13 : vector<4x32xf32>
    %cst_11 = arith.constant 0.000000e+00 : f32
    %15 = vector.broadcast %cst_11 : f32 to vector<4x32xf32>
    %16 = arith.maximumf %14, %15 : vector<4x32xf32>
    %c1_12 = arith.constant 1 : index
    %c0_13 = arith.constant 0 : index
    %c0_14 = arith.constant 0 : index
    %17 = vector.load %arg3[%c1_12, %c0_13, %c0_14] : memref<2x32x32xbf16, #tpu.memory_space<vmem>>, vector<1x32x32xbf16>
    %18 = vector.shape_cast %17 : vector<1x32x32xbf16> to vector<32x32xbf16>
    %19 = arith.truncf %16 : vector<4x32xf32> to vector<4x32xbf16>
    %cst_15 = arith.constant dense<0.000000e+00> : vector<4x32xf32>
    %20 = tpu.matmul %19, %18, %cst_15 {dimension_numbers = #tpu.dot_dimension_numbers<[1], [0], [0], [1], [0, 0, 1, 1], [], []>} : vector<4x32xbf16>, vector<32x32xbf16>, vector<4x32xf32> -> vector<4x32xf32>
    %c2 = arith.constant 2 : index
    %c0_16 = arith.constant 0 : index
    %21 = vector.load %arg5[%c2, %c0_16] : memref<4x128xf32, #tpu.memory_space<vmem>>, vector<1x32xf32>
    %22 = vector.broadcast %21 : vector<1x32xf32> to vector<4x32xf32>
    %23 = arith.addf %20, %22 : vector<4x32xf32>
    %cst_17 = arith.constant 0.000000e+00 : f32
    %24 = vector.broadcast %cst_17 : f32 to vector<4x32xf32>
    %25 = arith.maximumf %23, %24 : vector<4x32xf32>
    %26 = arith.truncf %25 : vector<4x32xf32> to vector<4x32xbf16>
    %c0_18 = arith.constant 0 : index
    %c0_19 = arith.constant 0 : index
    %27 = vector.load %arg4[%c0_18, %c0_19] : memref<32x128xbf16, #tpu.memory_space<vmem>>, vector<32x128xbf16>
    %cst_20 = arith.constant dense<0.000000e+00> : vector<4x128xf32>
    %28 = tpu.matmul %26, %27, %cst_20 {dimension_numbers = #tpu.dot_dimension_numbers<[1], [0], [0], [1], [0, 0, 1, 1], [], []>} : vector<4x32xbf16>, vector<32x128xbf16>, vector<4x128xf32> -> vector<4x128xf32>
    %c3 = arith.constant 3 : index
    %c0_21 = arith.constant 0 : index
    %29 = vector.load %arg5[%c3, %c0_21] : memref<4x128xf32, #tpu.memory_space<vmem>>, vector<1x128xf32>
    %30 = vector.broadcast %29 : vector<1x128xf32> to vector<4x128xf32>
    %31 = arith.addf %28, %30 : vector<4x128xf32>
    %c0_22 = arith.constant 0 : index
    %c0_23 = arith.constant 0 : index
    %32 = vector.load %arg6[%c0_22, %c0_23] : memref<4x128xf32, #tpu.memory_space<vmem>>, vector<4x128xf32>
    tpu.vector_store %arg6[%c0_22, %c0_23], %31 {strides = array<i32>} : memref<4x128xf32, #tpu.memory_space<vmem>>, vector<4x128xf32>,
    return
  }
  func.func @transform_0(%arg0: i32) -> (i32, i32) {
    %c0_i32 = arith.constant 0 : i32
    %c0_i32_0 = arith.constant 0 : i32
    return %arg0, %c0_i32 : i32, i32
  }
  func.func @transform_1(%arg0: i32) -> (i32, i32) {
    %c0_i32 = arith.constant 0 : i32
    %c0_i32_0 = arith.constant 0 : i32
    %c0_i32_1 = arith.constant 0 : i32
    return %c0_i32, %c0_i32_0 : i32, i32
  }
  func.func @transform_2(%arg0: i32) -> (i32, i32, i32) {
    %c0_i32 = arith.constant 0 : i32
    %c0_i32_0 = arith.constant 0 : i32
    %c0_i32_1 = arith.constant 0 : i32
    %c0_i32_2 = arith.constant 0 : i32
    return %c0_i32, %c0_i32_0, %c0_i32_1 : i32, i32, i32
  }
  func.func @transform_3(%arg0: i32) -> (i32, i32) {
    %c0_i32 = arith.constant 0 : i32
    %c0_i32_0 = arith.constant 0 : i32
    %c0_i32_1 = arith.constant 0 : i32
    return %c0_i32, %c0_i32_0 : i32, i32
  }
  func.func @transform_4(%arg0: i32) -> (i32, i32) {
    %c0_i32 = arith.constant 0 : i32
    %c0_i32_0 = arith.constant 0 : i32
    %c0_i32_1 = arith.constant 0 : i32
    return %c0_i32, %c0_i32_0 : i32, i32
  }
  func.func @transform_5(%arg0: i32) -> (i32, i32) {
    %c0_i32 = arith.constant 0 : i32
    %c0_i32_0 = arith.constant 0 : i32
    return %arg0, %c0_i32 : i32, i32
  }
}

</mosaic_0001>

<bundles_post_ra>
// kernel: tpu_custom_call.1
= control target key start
LH: loop header
LB: loop body
LE: loop exit
PB: predicated region body
PF: predicated region fallthrough
CT: control target
= control target key end

     0   :  { %v133_v27 = vlaneseq  ;;  %v1098_v35 = vmov 1983009808   ;;  %v1099_v40 = vmov 0.0   ;;  %vm1100_vm0 = vmmov 0   ;;  %s1336_s0 = inlined_call_operand.vmem [shape: bf16[4,784], index: 0, kind: input, shape index: {}]   ;;  %s1337_s1 = inlined_call_operand.vmem [shape: bf16[784,32], index: 1, kind: input, shape index: {}]   ;;  %s1338_s2 = inlined_call_operand.vmem [shape: bf16[2,32,32], index: 2, kind: input, shape index: {}]   ;;  %s1339_s3 = inlined_call_operand.vmem [shape: bf16[32,128], index: 3, kind: input, shape index: {}]   ;;  %s1340_s4 = inlined_call_operand.vmem [shape: f32[4,128], index: 4, kind: input, shape index: {}]   ;;  %s1341_s5 = inlined_call_operand.hbm [shape: f32[4,128], index: 5, kind: output, shape index: {}]  }
   0x1   :  { %v1019_v0 = vld [vmem:[%s1337_s1 + $0x78] sm:$0xff]   ;;  %v1023_v4 = vld [vmem:[%s1337_s1 + $0x70] sm:$0xff]   ;;  %v1027_v8 = vld [vmem:[%s1337_s1 + $0x68] sm:$0xff]   ;;  %v131_v36 = vunpack.c.l.s4 %v1098_v35  ;;  %vm462_vm1 = vcmask 130048  }
   0x2   :  { %v1020_v1 = vld [vmem:[%s1337_s1 + $0x38] sm:$0xff]   ;;  %908 = vmatprep.subr.bf16.mxu0 %v1019_v0  ;;  %v1024_v5 = vld [vmem:[%s1337_s1 + $0x30] sm:$0xff]   ;;  %v1028_v9 = vld [vmem:[%s1337_s1 + $0x28] sm:$0xff]   ;;  %v134_v32 = vshrl.u32 %v133_v27, 7 }
   0x3   :  { %v1021_v2 = vld [vmem:[%s1337_s1 + $0xf8] sm:$0xff]   ;;  %909 = vmatpush3.bf16.msra.mxu0 %v1020_v1  ;;  %v1025_v6 = vld [vmem:[%s1337_s1 + $0xf0] sm:$0xff]   ;;  %v1029_v10 = vld [vmem:[%s1337_s1 + $0xe8] sm:$0xff]   ;;  %v132_v38 = vunpack.c.0.s8 %v131_v36 }
   0x4   :  { %v1022_v3 = vld [vmem:[%s1337_s1 + $0xb8] sm:$0xff]   ;;  %930 = vmatprep.subr.bf16.mxu1 %v1021_v2  ;;  %910 = vmatprep.subr.bf16.mxu0 %v1023_v4  ;;  %v1026_v7 = vld [vmem:[%s1337_s1 + $0xb0] sm:$0xff]   ;;  %v1030_v11 = vld [vmem:[%s1337_s1 + $0xa8] sm:$0xff]  }
   0x5   :  { %931 = vmatpush3.bf16.msra.mxu1 %v1022_v3  ;;  %v1031_v12 = vld [vmem:[%s1337_s1 + $0x60] sm:$0xff]   ;;  %v1035_v16 = vld [vmem:[%s1337_s1 + $0x58] sm:$0xff]   ;;  %v1039_v20 = vld [vmem:[%s1337_s1 + $0x50] sm:$0xff]   ;;  %v135_v41 = vsub.s32 %v132_v38, %v134_v32 }
   0x6   :  { %932 = vmatprep.subr.bf16.mxu1 %v1025_v6  ;;  %v1032_v13 = vld [vmem:[%s1337_s1 + $0x20] sm:$0xff]   ;;  %v1036_v17 = vld [vmem:[%s1337_s1 + $0x18] sm:$0xff]   ;;  %v1040_v21 = vld [vmem:[%s1337_s1 + $0x10] sm:$0xff]  }
   0x7   :  { %911 = vmatpush3.bf16.msra.mxu0 %v1024_v5  ;;  %v1033_v14 = vld [vmem:[%s1337_s1 + $0xe0] sm:$0xff]   ;;  %v1037_v18 = vld [vmem:[%s1337_s1 + $0xd8] sm:$0xff]   ;;  %v1041_v22 = vld [vmem:[%s1337_s1 + $0xd0] sm:$0xff]  }
   0x8   :  { %912 = vmatprep.subr.bf16.mxu0 %v1027_v8  ;;  %v1034_v15 = vld [vmem:[%s1337_s1 + $0xa0] sm:$0xff]   ;;  %v1038_v19 = vld [vmem:[%s1337_s1 + $0x98] sm:$0xff]   ;;  %v1042_v23 = vld [vmem:[%s1337_s1 + $0x90] sm:$0xff]  }
   0x9   :  { %933 = vmatpush3.bf16.msra.mxu1 %v1026_v7  ;;  %v1043_v24 = vld [vmem:[%s1337_s1 + $0x48] sm:$0xff]   ;;  %v1047_v29 = vld [vmem:[%s1337_s1 + $0x40] sm:$0xff]   ;;  %v1051_v37 = vld [vmem:[%s1337_s1 + $0x178] sm:$0xff]  }
   0xa   :  { %934 = vmatprep.subr.bf16.mxu1 %v1029_v10  ;;  %v1044_v25 = vld [vmem:[%s1337_s1 + $0x8] sm:$0xff]   ;;  %v1048_v30 = vld [vmem:[%s1337_s1] sm:$0xff]   ;;  %v1053_v46 = vld [vmem:[%s1337_s1 + $0x138] sm:$0xff]  }
   0xb   :  { %913 = vmatpush3.bf16.msra.mxu0 %v1028_v9  ;;  %v1045_v26 = vld [vmem:[%s1337_s1 + $0xc8] sm:$0xff]   ;;  %v1049_v31 = vld [vmem:[%s1337_s1 + $0xc0] sm:$0xff]   ;;  %v1054_v47 = vld [vmem:[%s1337_s1 + $0x170] sm:$0xff]  }
   0xc   :  { %914 = vmatprep.subr.bf16.mxu0 %v1031_v12  ;;  %v1046_v28 = vld [vmem:[%s1337_s1 + $0x88] sm:$0xff]   ;;  %v22_v33 = vld [vmem:[%s1336_s0] sm:$0xff]  ;;  %v1055_v48 = vld [vmem:[%s1337_s1 + $0x130] sm:$0xff]  }
   0xd   :  { %935 = vmatpush3.bf16.msra.mxu1 %v1030_v11  ;;  %v1050_v34 = vld [vmem:[%s1337_s1 + $0x80] sm:$0xff]   ;;  %v129_v39 = vcombine.high %v22_v33, %v22_v33  ;;  %v136_v42 = vrot.slane %v22_v33, %v135_v41  ;;  %v1056_v49 = vld [vmem:[%s1337_s1 + $0x168] sm:$0xff]   ;;  %v1060_v57 = vld [vmem:[%s1337_s1 + $0x158] sm:$0xff]  }
   0xe   :  { %936 = vmatprep.subr.bf16.mxu1 %v1033_v14  ;;  %v1057_v50 = vld [vmem:[%s1337_s1 + $0x128] sm:$0xff]   ;;  %v1058_v51 = vld [vmem:[%s1337_s1 + $0x160] sm:$0xff]  }
   0xf   :  { %915 = vmatpush3.bf16.msra.mxu0 %v1032_v13  ;;  %v143_v43 = vrot.slane %v129_v39, %v135_v41  ;;  %v144_v44 = vcombine.high %v136_v42, %v136_v42  ;;  %v1068_v52 = vld [vmem:[%s1337_s1 + $0x180] sm:$0xff]   ;;  %v23_v53 = vld [vmem:[%s1336_s0 + $0x8] sm:$0x3f] }
  0x10   :  { %916 = vmatprep.subr.bf16.mxu0 %v1035_v16  ;;  %v1059_v54 = vld [vmem:[%s1337_s1 + $0x120] sm:$0xff]   ;;  %v146_v55 = vcombine.high %v23_v53, %v23_v53  ;;  %v153_v56 = vrot.slane %v23_v53, %v135_v41 }
  0x11   :  { %937 = vmatpush3.bf16.msra.mxu1 %v1034_v15  ;;  %v145_v45 = vcombine.high %v143_v43, %v143_v43  ;;  %498 = vmatprep.mubr.bf16.mxu0 %v144_v44 }
  0x12   :  { %938 = vmatprep.subr.bf16.mxu1 %v1037_v18  ;;  %v160_v58 = vrot.slane %v146_v55, %v135_v41  ;;  %v161_v59 = vcombine.high %v153_v56, %v153_v56 }
  0x13   :  { %917 = vmatpush3.bf16.msra.mxu0 %v1036_v17  ;;  %538 = vmatprep.mubr.bf16.mxu1 %v145_v45 }
  0x14   :  { %918 = vmatprep.subr.bf16.mxu0 %v1039_v20 }
  0x15   :  { %939 = vmatpush3.bf16.msra.mxu1 %v1038_v19 }
  0x16   :  { %940 = vmatprep.subr.bf16.mxu1 %v1041_v22 }
  0x17   :  { %919 = vmatpush3.bf16.msra.mxu0 %v1040_v21 }
  0x18   :  { %920 = vmatprep.subr.bf16.mxu0 %v1043_v24 }
  0x19   :  { %941 = vmatpush3.bf16.msra.mxu1 %v1042_v23 }
  0x1a   :  { %942 = vmatprep.subr.bf16.mxu1 %v1045_v26 }
  0x1b   :  { %921 = vmatpush3.bf16.msra.mxu0 %v1044_v25 }
  0x1c   :  { %922 = vmatprep.subr.bf16.mxu0 %v1047_v29 }
  0x1d   :  { %943 = vmatpush3.bf16.msra.mxu1 %v1046_v28 }
  0x1e   :  { %944 = vmatprep.subr.bf16.mxu1 %v1049_v31 }
  0x1f   :  { %923 = vmatpush3.bf16.msra.mxu0 %v1048_v30 }
  0x20   :  { %952 = vmatprep.subr.bf16.mxu0 %v1051_v37 }
  0x21   :  { %945 = vmatpush3.bf16.msra.mxu1 %v1050_v34 }
  0x22   :  { %985 = vmatprep.subr.bf16.mxu1 %v1099_v40  ;;  %499 = vmatmul.mubr.bf16.vlgmr.msra.gmra.mxu0 %v136_v42 }
  0x23   :  { %953 = vmatpush3.bf16.msra.mxu0 %v1053_v46 }
  0x24   :  { %539 = vmatmul.mubr.bf16.vlgmr.msra.gmra.mxu1 %v143_v43  ;;  %954 = vmatprep.subr.bf16.mxu0 %v1054_v47 }
  0x25   :  { %987 = vmatprep.mubr.msk.bf16.mxu1 %vm1100_vm0, %v1099_v40  ;;  %986 = vmatpush3.bf16.msra.mxu1 %v1068_v52 }
  0x26   :  { %991 = vmatprep.subr.bf16.mxu1 %v1099_v40 }
  0x27   :  { %955 = vmatpush3.bf16.msra.mxu0 %v1055_v48 }
  0x28   :  { %956 = vmatprep.subr.bf16.mxu0 %v1056_v49 }
  0x2b   :  { %957 = vmatpush3.bf16.msra.mxu0 %v1057_v50 }
  0x2c   :  { %958 = vmatprep.subr.bf16.mxu0 %v1058_v51 }
  0x2d   :  { %10 = vsyncpa [#allocation3], 0  ;;  %578 = vmatprep.mubr.bf16.mxu0 %v161_v59  ;;  %988 = vmatmul.mubr.msk.bf16.vlgmr.msra.gmra.mxu1 %vm462_vm1, %v160_v58  ;;  %v1061_v60 = vld [vmem:[%s1337_s1 + $0x118] sm:$0xff]   ;;  %v1062_v61 = vld [vmem:[%s1337_s1 + $0x150] sm:$0xff]   ;;  %vm649_vm2 = vcmask 261120   ;;  %s1101_s11 = smov [#allocation2]  }
  0x2e   :  { %995 = vmatprep.mubr.msk.bf16.mxu1 %vm1100_vm0, %v1099_v40  ;;  %v1063_v62 = vld [vmem:[%s1337_s1 + $0x110] sm:$0xff]   ;;  %v1064_v63 = vld [vmem:[%s1337_s1 + $0x148] sm:$0xff]   ;;  %v1066_v1 = vld [vmem:[%s1337_s1 + $0x140] sm:$0xff]  }
  0x2f   :  { %959 = vmatpush3.bf16.msra.mxu0 %v1059_v54  ;;  %v1065_v0 = vld [vmem:[%s1337_s1 + $0x108] sm:$0xff]   ;;  %v1067_v2 = vld [vmem:[%s1337_s1 + $0x100] sm:$0xff]   ;;  %v1072_v30 = vld [vmem:[%s1338_s2 + $0x18] sm:$0xff]  }
  0x30   :  { %960 = vmatprep.subr.bf16.mxu0 %v1060_v57  ;;  %v1070_v3 = vld [vmem:[%s1338_s2 + $0x8] sm:$0xff]   ;;  %v1071_v4 = vld [vmem:[%s1338_s2] sm:$0xff]   ;;  %v1073_v32 = vld [vmem:[%s1338_s2 + $0x10] sm:$0xff]  }
  0x31   :  { %992 = vmatpush3.bf16.msra.mxu1 %v1070_v3  ;;  %v841_v18 = vld [vmem:[%s1340_s4] ss:$0 sm:$0xff]  ;;  %v892_v33 = vld [vmem:[%s1340_s4 + $0x1] ss:$0 sm:$0xff]  ;;  %v1074_v39 = vld [vmem:[%s1339_s3 + $0x8] sm:$0xff]  }
  0x32   :  { %993 = vmatprep.subr.bf16.mxu1 %v1099_v40  ;;  %v1075_v43 = vld [vmem:[%s1339_s3] sm:$0xff]   ;;  %s833_s3 = sshll.u32 %s1101_s11, 4  ;;  %s834_s3 = int_to_ptr.vmem [resolvable:$true] %s833_s3 }
  0x33   :  { %961 = vmatpush3.bf16.msra.mxu0 %v1061_v60  ;;  %v900_v44 = vld [vmem:[%s1340_s4 + $0x2] ss:$0 sm:$0xff]  ;;  %s1076_s12 = scalar_lea.vmem %s834_s3, 64  ;;  %p1081_p1 = scmp.lt.s32.totalorder %s834_s3, %s834_s3 }
  0x34   :  { %962 = vmatprep.subr.bf16.mxu0 %v1062_v61  ;;  %p1077_p0 = scmp.ne.s32.totalorder %s834_s3, %s1076_s12  ;;  %p1082_p2 = scmp.lt.s32.totalorder %s1076_s12, %s1076_s12 }
  0x35   :  { %994 = vmatpush3.bf16.msra.mxu1 %v1071_v4 }
  0x36   :  { %999 = vmatprep.subr.bf16.mxu1 %v1099_v40  ;;  %p1083_p3 = por %p1082_p2, %p1081_p1 }
  0x37   :  { %963 = vmatpush3.bf16.msra.mxu0 %v1063_v62 }
  0x38   :  { %964 = vmatprep.subr.bf16.mxu0 %v1064_v63  ;;  %p1084_p4 = pnand %p1083_p3, %p1077_p0 }
  0x3b   :  { %965 = vmatpush3.bf16.msra.mxu0 %v1065_v0 }
  0x3c   :  { %966 = vmatprep.subr.bf16.mxu0 %v1066_v1 }
  0x3f   :  { %967 = vmatpush3.bf16.msra.mxu0 %v1067_v2 }
  0x42   :  { %579 = vmatmul.mubr.bf16.vlgmr.msra.gmra.mxu0 %v153_v56 }
  0xe2   :  { %v924_v5 = vpop.f32.mrf.mxu0 }
  0xe4   :  { %v946_v6 = vpop.f32.mrf.mxu1  ;;  %v925_v7 = vpop.f32.mrf.mxu0 }
  0xe5   :  { %v926_v17 = vadd.f32 %v925_v7, %v924_v5 }
  0xe6   :  { %v947_v8 = vpop.f32.mrf.mxu1  ;;  %v927_v9 = vpop.f32.mrf.mxu0 }
  0xe7   :  { %v501_v19 = vadd.f32 %v926_v17, %v841_v18  ;;  %v948_v20 = vadd.f32 %v947_v8, %v946_v6 }
  0xe8   :  { %v949_v10 = vpop.f32.mrf.mxu1  ;;  %v928_v11 = vpop.f32.mrf.mxu0 }
  0xe9   :  { %v541_v23 = vadd.f32 %v948_v20, %v501_v19 }
  0xea   :  { %v950_v12 = vpop.f32.mrf.mxu1 }
  0xed   :  { %v620_v13 = vpop.f32.mrf.mxu1 }
  0xef   :  { %v989_v14 = vpop.f32.mrf.mxu1 }
  0xf1   :  { %v623_v15 = vpop.f32.mrf.mxu1 }
  0xf3   :  { %v990_v16 = vpop.f32.mrf.mxu1 }
 0x102   :  { %v968_v21 = vpop.f32.mrf.mxu0 }
 0x104   :  { %v969_v22 = vpop.f32.mrf.mxu0 }
 0x105   :  { %v970_v24 = vadd.f32 %v969_v22, %v968_v21 }
 0x106   :  { %v971_v25 = vpop.f32.mrf.mxu0 }
 0x107   :  { %v581_v26 = vadd.f32 %v970_v24, %v541_v23 }
 0x108   :  { %v972_v27 = vpop.f32.mrf.mxu0 }
 0x109   :  { %v621_v28 = vadd.f32 %v620_v13, %v581_v26 }
 0x10b   :  { %v626_v29 = vmax.f32 %v621_v28, 0.0 }
 0x10d   :  { %v631_v31 = vpack.c.bf16 %v626_v29, %v626_v29 }
 0x10f   :  { %996 = vmatmul.mubr.msk.bf16.vlgmr.msra.gmra.mxu1 %vm649_vm2, %v631_v31 }
 0x110   :  { %1000 = vmatpush3.bf16.msra.mxu1 %v1072_v30  ;;  %1003 = vmatprep.mubr.msk.bf16.mxu1 %vm1100_vm0, %v1099_v40 }
 0x111   :  { %1001 = vmatprep.subr.bf16.mxu1 %v1099_v40 }
 0x114   :  { %1002 = vmatpush3.bf16.msra.mxu1 %v1073_v32 }
 0x115   :  { %1007 = vmatprep.subr.bf16.mxu1 %v1099_v40 }
 0x1cf   :  { %v687_v34 = vpop.f32.mrf.mxu1 }
 0x1d0   :  { %v688_v35 = vadd.f32 %v892_v33, %v687_v34 }
 0x1d1   :  { %v997_v36 = vpop.f32.mrf.mxu1 }
 0x1d2   :  { %v693_v37 = vmax.f32 %v688_v35, 0.0 }
 0x1d3   :  { %v690_v38 = vpop.f32.mrf.mxu1 }
 0x1d4   :  { %v699_v41 = vpack.c.bf16 %v693_v37, %v693_v37 }
 0x1d5   :  { %v998_v42 = vpop.f32.mrf.mxu1 }
 0x1d6   :  { %1004 = vmatmul.mubr.msk.bf16.vlgmr.msra.gmra.mxu1 %vm649_vm2, %v699_v41 }
 0x1d7   :  { %1008 = vmatpush3.bf16.msra.mxu1 %v1074_v39  ;;  %1011 = vmatprep.mubr.msk.bf16.mxu1 %vm1100_vm0, %v1099_v40 }
 0x1d8   :  { %1009 = vmatprep.subr.bf16.mxu1 %v1099_v40  ;;  %v904_v40 = vld [vmem:[%s1340_s4 + $0x3] ss:$0 sm:$0xff] }
 0x1db   :  { %1010 = vmatpush3.bf16.msra.mxu1 %v1075_v43 }
 0x296   :  { %v754_v45 = vpop.f32.mrf.mxu1 }
 0x297   :  { %v755_v46 = vadd.f32 %v900_v44, %v754_v45 }
 0x298   :  { %v1005_v47 = vpop.f32.mrf.mxu1 }
 0x299   :  { %v760_v48 = vmax.f32 %v755_v46, 0.0 }
 0x29a   :  { %v757_v49 = vpop.f32.mrf.mxu1 }
 0x29b   :  { %v761_v50 = vpack.c.bf16 %v760_v48, %v760_v48 }
 0x29c   :  { %v1006_v51 = vpop.f32.mrf.mxu1 }
 0x29d   :  { %1012 = vmatmul.mubr.msk.bf16.vlgmr.msra.gmra.mxu1 %vm649_vm2, %v761_v50 }
 0x35d   :  { %v820_v52 = vpop.f32.mrf.mxu1 }
 0x35e   :  { %v821_v53 = vadd.f32 %v904_v40, %v820_v52 }
 0x35f   :  { %v1013_v54 = vpop.f32.mrf.mxu1 }
 0x360   :  { %826 = vst [vmem:[#allocation2] sm:$0xf] %v821_v53 }
 0x361   :  { %v823_v55 = vpop.f32.mrf.mxu1 }
 0x362   :  { %1087 = shalt.err (!%p1084_p4)
}
 0x363   :  { %836 = dma.vmem_to_hbm [thread:$0]  %s834_s3, 64, %s1341_s5, [#allocation3]   ;;  %v1014_v56 = vpop.f32.mrf.mxu1 }
 0x364   :  { %1096 = dma.done.wait [#allocation3], 64  }
 0x365   :  { %1097 = vsyncadd [#allocation3], 4294967232 }
 0x366   :  { %840 = vsyncpa [#allocation3], 1 }

</bundles_post_ra>
